<compile_context>
chip_gen: v6e
topology: v6e:2x2x1
jax: 0.10.0
libtpu: 0.0.40
codegen_flags: <defaults>
</compile_context>

<pallas_src>
import jax
import jax.numpy as jnp
from jax.experimental import pallas as pl
from jax.experimental.pallas import tpu as pltpu

C_IN, C_OUT, KH, KW = 4, 8, 3, 3
KK = KH * KW * C_IN          # 36 = im2col contraction size
KK_PAD = 40                  # 36 + bias row + zero pad -> multiple of 8 sublanes


def _dist_student_kernel(p_ld_ref, p_ud_ref, w_ref, o_ld_ref, o_ud_ref):
    # p_*_ref: (KK_PAD, n*H*W)  im2col patches + ones bias row (lane axis = n*H*W)
    # w_ref:   (C_OUT, KK_PAD)  conv weights with bias folded in as a column
    # o_*_ref: (n, C_OUT, H*W)  lane-dense, NCHW-contiguous output
    w = w_ref[...]
    for p_ref, o_ref in ((p_ld_ref, o_ld_ref), (p_ud_ref, o_ud_ref)):
        n, _, hw = o_ref.shape
        # One matmul per batch: (C_OUT, 40) @ (40, n*H*W) -> (C_OUT, n*H*W),
        # bias already folded in; ReLU on the whole slab.
        y = jnp.maximum(
            jnp.dot(w, p_ref[...], preferred_element_type=jnp.float32), 0.0)
        for i in range(n):  # static unroll: n full-width (8, 256) stores
            o_ref[i] = y[:, i * hw:(i + 1) * hw].astype(o_ref.dtype)


def _im2col_aug(x_nchw):
    """(n, C, H, W) -> (KK_PAD, n*H*W): rows ordered (kh, kw, c_in), then a
    ones row (bias) and zero-pad rows up to KK_PAD.  Lane axis = (n, h, w)."""
    n, c, h, w = x_nchw.shape
    hw = h * w
    xp = jnp.pad(x_nchw, ((0, 0), (0, 0), (1, 1), (1, 1)))
    pats = jnp.stack(
        [xp[:, :, kh:kh + h, kw:kw + w] for kh in range(KH) for kw in range(KW)],
        axis=0)                                            # (9, n, c, h, w)
    pats = pats.transpose(0, 2, 1, 3, 4).reshape(KH * KW * c, n * hw)   # (36, n*hw)
    ones = jnp.ones((1, n * hw), pats.dtype)               # bias row
    pad = jnp.zeros((KK_PAD - KH * KW * c - 1, n * hw), pats.dtype)
    return jnp.concatenate([pats, ones, pad], axis=0)      # (40, n*hw)


def dist_student_forward(ld_batch, ud_batch, w, b):
    """DistStudent.forward: same student (shared weights) on both batches,
    one fused pallas_call, tuple of outputs."""
    n, c, h, wd = ld_batch.shape
    assert ud_batch.shape == ld_batch.shape
    hw = h * wd

    p_ld = _im2col_aug(ld_batch)
    p_ud = _im2col_aug(ud_batch)

    # Weight matrix with bias folded in as column KK, zero-padded to KK_PAD.
    w_mat = jnp.transpose(w.reshape(KK, C_OUT))                        # (C_OUT, 36)
    w_aug = jnp.concatenate(
        [w_mat, b.reshape(C_OUT, 1),
         jnp.zeros((C_OUT, KK_PAD - KK - 1), w_mat.dtype)], axis=1)    # (C_OUT, 40)

    flops = 2 * C_OUT * KK_PAD * (2 * n * hw)
    bytes_accessed = 4 * (2 * KK_PAD * n * hw + C_OUT * KK_PAD + 2 * n * C_OUT * hw)

    out_sd = jax.ShapeDtypeStruct((n, C_OUT, hw), jnp.float32)
    y_ld, y_ud = pl.pallas_call(
        _dist_student_kernel,
        out_shape=(out_sd, out_sd),
        grid=(1,),
        in_specs=[
            pl.BlockSpec((KK_PAD, n * hw), lambda i: (0, 0)),
            pl.BlockSpec((KK_PAD, n * hw), lambda i: (0, 0)),
            pl.BlockSpec((C_OUT, KK_PAD), lambda i: (0, 0)),
        ],
        out_specs=(
            pl.BlockSpec((n, C_OUT, hw), lambda i: (0, 0, 0)),
            pl.BlockSpec((n, C_OUT, hw), lambda i: (0, 0, 0)),
        ),
        compiler_params=pltpu.CompilerParams(
            dimension_semantics=("arbitrary",)),
        cost_estimate=pl.CostEstimate(
            flops=flops, transcendentals=0, bytes_accessed=bytes_accessed),
    )(p_ld, p_ud, w_aug)

    # (n, C_OUT, H*W) is already NCHW-contiguous: free reshape, no transpose.
    return (y_ld.reshape(n, C_OUT, h, wd), y_ud.reshape(n, C_OUT, h, wd))


def _reference(x_nchw, w, b):
    y = jax.lax.conv_general_dilated(
        x_nchw, w, window_strides=(1, 1), padding=((1, 1), (1, 1)),
        dimension_numbers=("NCHW", "HWIO", "NCHW"))
    y = y + b.reshape(1, C_OUT, 1, 1)
    return jnp.maximum(y, 0.0)


if __name__ == "__main__":
    key = jax.random.PRNGKey(0)
    k_ld, k_ud, k_w, k_b = jax.random.split(key, 4)

    N, H, W = 2, 16, 16
    ld_batch = jax.random.normal(k_ld, (N, C_IN, H, W), jnp.float32)
    ud_batch = jax.random.normal(k_ud, (N, C_IN, H, W), jnp.float32)

    # Deterministic student parameters (conv weight HWIO + bias).
    w = jax.random.normal(k_w, (KH, KW, C_IN, C_OUT), jnp.float32) * 0.1
    b = jax.random.normal(k_b, (C_OUT,), jnp.float32) * 0.05

    fwd = jax.jit(dist_student_forward)
    out_ld, out_ud = fwd(ld_batch, ud_batch, w, b)
    jax.block_until_ready((out_ld, out_ud))

    ref_ld = _reference(ld_batch, w, b)
    ref_ud = _reference(ud_batch, w, b)
    assert out_ld.shape == (N, C_OUT, H, W) and out_ud.shape == (N, C_OUT, H, W)
    assert jnp.allclose(out_ld, ref_ld, atol=1e-4, rtol=1e-4)
    assert jnp.allclose(out_ud, ref_ud, atol=1e-4, rtol=1e-4)

    print("KERNEL_OK")
</pallas_src>

<mosaic_0001>
module attributes {stable_mosaic.version = 11 : i64} {
  func.func @_dist_student_kernel(%arg0: i32, %arg1: memref<40x512xf32, #tpu.memory_space<vmem>>, %arg2: memref<40x512xf32, #tpu.memory_space<vmem>>, %arg3: memref<8x40xf32, #tpu.memory_space<vmem>>, %arg4: memref<2x8x256xf32, #tpu.memory_space<vmem>>, %arg5: memref<2x8x256xf32, #tpu.memory_space<vmem>>) attributes {dimension_semantics = [#tpu.dimension_semantics<arbitrary>], iteration_bounds = array<i64: 1>, scalar_prefetch = 0 : i64, scratch_operands = 0 : i64, tpu.core_type = #tpu.core_type<tc>, window_params = [{pipeline_mode = #tpu.pipeline_mode<synchronous>, transform_indices = @transform_0, window_bounds = array<i64: 40, 512>}, {pipeline_mode = #tpu.pipeline_mode<synchronous>, transform_indices = @transform_1, window_bounds = array<i64: 40, 512>}, {pipeline_mode = #tpu.pipeline_mode<synchronous>, transform_indices = @transform_2, window_bounds = array<i64: 8, 40>}, {pipeline_mode = #tpu.pipeline_mode<synchronous>, transform_indices = @transform_3, window_bounds = array<i64: 2, 8, 256>}, {pipeline_mode = #tpu.pipeline_mode<synchronous>, transform_indices = @transform_4, window_bounds = array<i64: 2, 8, 256>}]} {
    %c0 = arith.constant 0 : index
    %c0_0 = arith.constant 0 : index
    %0 = vector.load %arg3[%c0, %c0_0] : memref<8x40xf32, #tpu.memory_space<vmem>>, vector<8x40xf32>
    %c0_1 = arith.constant 0 : index
    %c0_2 = arith.constant 0 : index
    %1 = vector.load %arg1[%c0_1, %c0_2] : memref<40x512xf32, #tpu.memory_space<vmem>>, vector<40x512xf32>
    %cst = arith.constant dense<0.000000e+00> : vector<8x512xf32>
    %2 = tpu.matmul %0, %1, %cst {dimension_numbers = #tpu.dot_dimension_numbers<[1], [0], [0], [1], [0, 0, 1, 1], [], []>} : vector<8x40xf32>, vector<40x512xf32>, vector<8x512xf32> -> vector<8x512xf32>
    %cst_3 = arith.constant 0.000000e+00 : f32
    %3 = vector.broadcast %cst_3 : f32 to vector<8x512xf32>
    %4 = arith.maximumf %2, %3 : vector<8x512xf32>
    %5 = vector.extract_strided_slice %4 {offsets = [0, 0], sizes = [8, 256], strides = [1, 1]} : vector<8x512xf32> to vector<8x256xf32>
    %c0_4 = arith.constant 0 : index
    %c0_5 = arith.constant 0 : index
    %c0_6 = arith.constant 0 : index
    %6 = vector.load %arg4[%c0_4, %c0_5, %c0_6] : memref<2x8x256xf32, #tpu.memory_space<vmem>>, vector<1x8x256xf32>
    %7 = vector.shape_cast %6 : vector<1x8x256xf32> to vector<8x256xf32>
    %8 = vector.shape_cast %5 : vector<8x256xf32> to vector<1x8x256xf32>
    tpu.vector_store %arg4[%c0_4, %c0_5, %c0_6], %8 {strides = array<i32>} : memref<2x8x256xf32, #tpu.memory_space<vmem>>, vector<1x8x256xf32>,
    %9 = vector.extract_strided_slice %4 {offsets = [0, 256], sizes = [8, 256], strides = [1, 1]} : vector<8x512xf32> to vector<8x256xf32>
    %c1 = arith.constant 1 : index
    %c0_7 = arith.constant 0 : index
    %c0_8 = arith.constant 0 : index
    %10 = vector.load %arg4[%c1, %c0_7, %c0_8] : memref<2x8x256xf32, #tpu.memory_space<vmem>>, vector<1x8x256xf32>
    %11 = vector.shape_cast %10 : vector<1x8x256xf32> to vector<8x256xf32>
    %12 = vector.shape_cast %9 : vector<8x256xf32> to vector<1x8x256xf32>
    tpu.vector_store %arg4[%c1, %c0_7, %c0_8], %12 {strides = array<i32>} : memref<2x8x256xf32, #tpu.memory_space<vmem>>, vector<1x8x256xf32>,
    %c0_9 = arith.constant 0 : index
    %c0_10 = arith.constant 0 : index
    %13 = vector.load %arg2[%c0_9, %c0_10] : memref<40x512xf32, #tpu.memory_space<vmem>>, vector<40x512xf32>
    %cst_11 = arith.constant dense<0.000000e+00> : vector<8x512xf32>
    %14 = tpu.matmul %0, %13, %cst_11 {dimension_numbers = #tpu.dot_dimension_numbers<[1], [0], [0], [1], [0, 0, 1, 1], [], []>} : vector<8x40xf32>, vector<40x512xf32>, vector<8x512xf32> -> vector<8x512xf32>
    %cst_12 = arith.constant 0.000000e+00 : f32
    %15 = vector.broadcast %cst_12 : f32 to vector<8x512xf32>
    %16 = arith.maximumf %14, %15 : vector<8x512xf32>
    %17 = vector.extract_strided_slice %16 {offsets = [0, 0], sizes = [8, 256], strides = [1, 1]} : vector<8x512xf32> to vector<8x256xf32>
    %c0_13 = arith.constant 0 : index
    %c0_14 = arith.constant 0 : index
    %c0_15 = arith.constant 0 : index
    %18 = vector.load %arg5[%c0_13, %c0_14, %c0_15] : memref<2x8x256xf32, #tpu.memory_space<vmem>>, vector<1x8x256xf32>
    %19 = vector.shape_cast %18 : vector<1x8x256xf32> to vector<8x256xf32>
    %20 = vector.shape_cast %17 : vector<8x256xf32> to vector<1x8x256xf32>
    tpu.vector_store %arg5[%c0_13, %c0_14, %c0_15], %20 {strides = array<i32>} : memref<2x8x256xf32, #tpu.memory_space<vmem>>, vector<1x8x256xf32>,
    %21 = vector.extract_strided_slice %16 {offsets = [0, 256], sizes = [8, 256], strides = [1, 1]} : vector<8x512xf32> to vector<8x256xf32>
    %c1_16 = arith.constant 1 : index
    %c0_17 = arith.constant 0 : index
    %c0_18 = arith.constant 0 : index
    %22 = vector.load %arg5[%c1_16, %c0_17, %c0_18] : memref<2x8x256xf32, #tpu.memory_space<vmem>>, vector<1x8x256xf32>
    %23 = vector.shape_cast %22 : vector<1x8x256xf32> to vector<8x256xf32>
    %24 = vector.shape_cast %21 : vector<8x256xf32> to vector<1x8x256xf32>
    tpu.vector_store %arg5[%c1_16, %c0_17, %c0_18], %24 {strides = array<i32>} : memref<2x8x256xf32, #tpu.memory_space<vmem>>, vector<1x8x256xf32>,
    return
  }
  func.func @transform_0(%arg0: i32) -> (i32, i32) {
    %c0_i32 = arith.constant 0 : i32
    %c0_i32_0 = arith.constant 0 : i32
    %c0_i32_1 = arith.constant 0 : i32
    return %c0_i32, %c0_i32_0 : i32, i32
  }
  func.func @transform_1(%arg0: i32) -> (i32, i32) {
    %c0_i32 = arith.constant 0 : i32
    %c0_i32_0 = arith.constant 0 : i32
    %c0_i32_1 = arith.constant 0 : i32
    return %c0_i32, %c0_i32_0 : i32, i32
  }
  func.func @transform_2(%arg0: i32) -> (i32, i32) {
    %c0_i32 = arith.constant 0 : i32
    %c0_i32_0 = arith.constant 0 : i32
    %c0_i32_1 = arith.constant 0 : i32
    return %c0_i32, %c0_i32_0 : i32, i32
  }
  func.func @transform_3(%arg0: i32) -> (i32, i32, i32) {
    %c0_i32 = arith.constant 0 : i32
    %c0_i32_0 = arith.constant 0 : i32
    %c0_i32_1 = arith.constant 0 : i32
    %c0_i32_2 = arith.constant 0 : i32
    return %c0_i32, %c0_i32_0, %c0_i32_1 : i32, i32, i32
  }
  func.func @transform_4(%arg0: i32) -> (i32, i32, i32) {
    %c0_i32 = arith.constant 0 : i32
    %c0_i32_0 = arith.constant 0 : i32
    %c0_i32_1 = arith.constant 0 : i32
    %c0_i32_2 = arith.constant 0 : i32
    return %c0_i32, %c0_i32_0, %c0_i32_1 : i32, i32, i32
  }
}

</mosaic_0001>

<bundles_post_ra>
// kernel: dist_student_forward.1
= control target key start
LH: loop header
LB: loop body
LE: loop exit
PB: predicated region body
PF: predicated region fallthrough
CT: control target
= control target key end

     0   :  { %v380_v3 = vmov 0.0   ;;  %vm37_vm0 = vcmask 326656   ;;  %s561_s0 = inlined_call_operand.vmem [shape: f32[40,512], index: 0, kind: input, shape index: {}]   ;;  %s562_s2 = inlined_call_operand.vmem [shape: f32[8,40], index: 2, kind: input, shape index: {}]   ;;  %s563_s1 = inlined_call_operand.vmem [shape: f32[40,512], index: 1, kind: input, shape index: {}]   ;;  %s564_s3 = inlined_call_operand.vmem [shape: f32[2,8,256], index: 3, kind: output, shape index: {0}]   ;;  %s565_s4 = inlined_call_operand.vmem [shape: f32[2,8,256], index: 4, kind: output, shape index: {1}]  }
   0x1   :  { %v34_v0 = vld [vmem:[%s561_s0 + $0x88] sm:$0xff]  ;;  %v36_v1 = vld [vmem:[%s561_s0 + $0x98] sm:$0xff]  ;;  %v33_v2 = vld [vmem:[%s561_s0 + $0x80] sm:$0xff]  ;;  %105 = vmatprep.mubr.f32.mxu0 %v380_v3  ;;  %176 = vmatprep.mubr.f32.mxu1 %v380_v3 }
   0x2   :  { %63 = vmatprep.subr.mxu0 %v34_v0  ;;  %134 = vmatprep.subr.mxu1 %v36_v1  ;;  %v35_v4 = vld [vmem:[%s561_s0 + $0x90] sm:$0xff]  ;;  %v30_v5 = vld [vmem:[%s561_s0 + $0x68] sm:$0xff]  ;;  %v32_v6 = vld [vmem:[%s561_s0 + $0x78] sm:$0xff] }
   0x3   :  { %64 = vmatpush1.msra.mxu0 %v33_v2  ;;  %135 = vmatpush1.msra.mxu1 %v35_v4  ;;  %v29_v7 = vld [vmem:[%s561_s0 + $0x60] sm:$0xff]  ;;  %v31_v8 = vld [vmem:[%s561_s0 + $0x70] sm:$0xff]  ;;  %v26_v9 = vld [vmem:[%s561_s0 + $0x48] sm:$0xff] }
   0x4   :  { %65 = vmatprep.subr.mxu0 %v30_v5  ;;  %136 = vmatprep.subr.mxu1 %v32_v6  ;;  %v28_v10 = vld [vmem:[%s561_s0 + $0x58] sm:$0xff]  ;;  %v25_v11 = vld [vmem:[%s561_s0 + $0x40] sm:$0xff]  ;;  %v27_v12 = vld [vmem:[%s561_s0 + $0x50] sm:$0xff] }
   0x5   :  { %66 = vmatpush1.msra.mxu0 %v29_v7  ;;  %137 = vmatpush1.msra.mxu1 %v31_v8  ;;  %v22_v13 = vld [vmem:[%s561_s0 + $0x28] sm:$0xff]  ;;  %v24_v14 = vld [vmem:[%s561_s0 + $0x38] sm:$0xff]  ;;  %v21_v15 = vld [vmem:[%s561_s0 + $0x20] sm:$0xff] }
   0x6   :  { %67 = vmatprep.subr.mxu0 %v26_v9  ;;  %138 = vmatprep.subr.mxu1 %v28_v10  ;;  %v23_v16 = vld [vmem:[%s561_s0 + $0x30] sm:$0xff]  ;;  %v18_v17 = vld [vmem:[%s561_s0 + $0x8] sm:$0xff]  ;;  %v20_v18 = vld [vmem:[%s561_s0 + $0x18] sm:$0xff] }
   0x7   :  { %68 = vmatpush1.msra.mxu0 %v25_v11  ;;  %139 = vmatpush1.msra.mxu1 %v27_v12  ;;  %v17_v19 = vld [vmem:[%s561_s0] sm:$0xff]  ;;  %v19_v20 = vld [vmem:[%s561_s0 + $0x10] sm:$0xff]  ;;  %v209_v22 = vld [vmem:[%s563_s1 + $0x88] sm:$0xff] }
   0x8   :  { %69 = vmatprep.subr.mxu0 %v22_v13  ;;  %140 = vmatprep.subr.mxu1 %v24_v14  ;;  %v16_v21 = vld [vmem:[%s562_s2] sm:$0xff]  ;;  %v211_v23 = vld [vmem:[%s563_s1 + $0x98] sm:$0xff]  ;;  %v210_v25 = vld [vmem:[%s563_s1 + $0x90] sm:$0xff] }
   0x9   :  { %70 = vmatpush1.msra.mxu0 %v21_v15  ;;  %141 = vmatpush1.msra.mxu1 %v23_v16  ;;  %v208_v24 = vld [vmem:[%s563_s1 + $0x80] sm:$0xff]  ;;  %v205_v26 = vld [vmem:[%s563_s1 + $0x68] sm:$0xff]  ;;  %v207_v27 = vld [vmem:[%s563_s1 + $0x78] sm:$0xff] }
   0xa   :  { %71 = vmatprep.subr.mxu0 %v18_v17  ;;  %142 = vmatprep.subr.mxu1 %v20_v18  ;;  %v204_v28 = vld [vmem:[%s563_s1 + $0x60] sm:$0xff]  ;;  %v206_v29 = vld [vmem:[%s563_s1 + $0x70] sm:$0xff]  ;;  %v201_v30 = vld [vmem:[%s563_s1 + $0x48] sm:$0xff] }
   0xb   :  { %72 = vmatpush1.msra.mxu0 %v17_v19  ;;  %143 = vmatpush1.msra.mxu1 %v19_v20  ;;  %v203_v31 = vld [vmem:[%s563_s1 + $0x58] sm:$0xff]  ;;  %v200_v32 = vld [vmem:[%s563_s1 + $0x40] sm:$0xff]  ;;  %v202_v33 = vld [vmem:[%s563_s1 + $0x50] sm:$0xff] }
   0xc   :  { %371 = vmatmul.mubr.msk.f32.vlgmr.msra.gmra.mxu0 %vm37_vm0, %v16_v21  ;;  %372 = vmatmul.mubr.msk.f32.vlgmr.msra.gmra.mxu1 %vm37_vm0, %v16_v21  ;;  %v197_v34 = vld [vmem:[%s563_s1 + $0x28] sm:$0xff]  ;;  %v199_v35 = vld [vmem:[%s563_s1 + $0x38] sm:$0xff]  ;;  %v196_v36 = vld [vmem:[%s563_s1 + $0x20] sm:$0xff] }
   0xd   :  { %234 = vmatprep.subr.mxu0 %v209_v22  ;;  %305 = vmatprep.subr.mxu1 %v211_v23  ;;  %v198_v37 = vld [vmem:[%s563_s1 + $0x30] sm:$0xff]  ;;  %v193_v38 = vld [vmem:[%s563_s1 + $0x8] sm:$0xff]  ;;  %v195_v39 = vld [vmem:[%s563_s1 + $0x18] sm:$0xff] }
   0xe   :  { %235 = vmatpush1.msra.mxu0 %v208_v24  ;;  %306 = vmatpush1.msra.mxu1 %v210_v25  ;;  %v192_v40 = vld [vmem:[%s563_s1] sm:$0xff]  ;;  %v194_v41 = vld [vmem:[%s563_s1 + $0x10] sm:$0xff] }
   0xf   :  { %236 = vmatprep.subr.mxu0 %v205_v26  ;;  %307 = vmatprep.subr.mxu1 %v207_v27 }
  0x10   :  { %237 = vmatpush1.msra.mxu0 %v204_v28  ;;  %308 = vmatpush1.msra.mxu1 %v206_v29 }
  0x11   :  { %238 = vmatprep.subr.mxu0 %v201_v30  ;;  %309 = vmatprep.subr.mxu1 %v203_v31 }
  0x12   :  { %239 = vmatpush1.msra.mxu0 %v200_v32  ;;  %310 = vmatpush1.msra.mxu1 %v202_v33 }
  0x13   :  { %240 = vmatprep.subr.mxu0 %v197_v34  ;;  %311 = vmatprep.subr.mxu1 %v199_v35 }
  0x14   :  { %241 = vmatpush1.msra.mxu0 %v196_v36  ;;  %312 = vmatpush1.msra.mxu1 %v198_v37 }
  0x15   :  { %242 = vmatprep.subr.mxu0 %v193_v38  ;;  %313 = vmatprep.subr.mxu1 %v195_v39 }
  0x16   :  { %243 = vmatpush1.msra.mxu0 %v192_v40  ;;  %276 = vmatprep.mubr.f32.mxu0 %v380_v3 }
  0x17   :  { %314 = vmatpush1.msra.mxu1 %v194_v41  ;;  %347 = vmatprep.mubr.f32.mxu1 %v380_v3 }
  0x18   :  { %375 = vmatmul.mubr.msk.f32.vlgmr.msra.gmra.mxu0 %vm37_vm0, %v16_v21  ;;  %376 = vmatmul.mubr.msk.f32.vlgmr.msra.gmra.mxu1 %vm37_vm0, %v16_v21 }
  0xcc   :  { %v107_v42 = vpop.f32.mrf.mxu0  ;;  %v178_v43 = vpop.f32.mrf.mxu1 }
  0xcd   :  { %v183_v44 = vmax.f32 %v107_v42, 0.0  ;;  %v185_v45 = vmax.f32 %v178_v43, 0.0 }
  0xce   :  { %v109_v46 = vpop.f32.mrf.mxu0  ;;  %v180_v47 = vpop.f32.mrf.mxu1 }
  0xcf   :  { %187 = vst [vmem:[%s564_s3] sm:$0xff] %v183_v44  ;;  %373 = vst [vmem:[%s564_s3 + $0x10] sm:$0xff] %v185_v45  ;;  %v184_v48 = vmax.f32 %v109_v46, 0.0  ;;  %v186_v49 = vmax.f32 %v180_v47, 0.0 }
  0xd1   :  { %188 = vst [vmem:[%s564_s3 + $0x8] sm:$0xff] %v184_v48  ;;  %374 = vst [vmem:[%s564_s3 + $0x18] sm:$0xff] %v186_v49 }
  0xd8   :  { %v278_v50 = vpop.f32.mrf.mxu0  ;;  %v349_v51 = vpop.f32.mrf.mxu1 }
  0xd9   :  { %v354_v52 = vmax.f32 %v278_v50, 0.0  ;;  %v356_v53 = vmax.f32 %v349_v51, 0.0 }
  0xda   :  { %v280_v54 = vpop.f32.mrf.mxu0  ;;  %v351_v55 = vpop.f32.mrf.mxu1 }
  0xdb   :  { %358 = vst [vmem:[%s565_s4] sm:$0xff] %v354_v52  ;;  %377 = vst [vmem:[%s565_s4 + $0x10] sm:$0xff] %v356_v53  ;;  %v355_v56 = vmax.f32 %v280_v54, 0.0  ;;  %v357_v57 = vmax.f32 %v351_v55, 0.0 }
  0xdd   :  { %359 = vst [vmem:[%s565_s4 + $0x8] sm:$0xff] %v355_v56  ;;  %378 = vst [vmem:[%s565_s4 + $0x18] sm:$0xff] %v357_v57 }

</bundles_post_ra>
